<compile_context>
chip_gen: v7x
topology: tpu7x:2x2x1
jax: 0.10.0
libtpu: 0.0.40
codegen_flags: <defaults>
</compile_context>

<pallas_src>
import functools
import math

import jax
import jax.numpy as jnp
from jax import lax
from jax.experimental import pallas as pl
from jax.experimental.pallas import tpu as pltpu


def _gelu(x, approx):
    if approx:
        # tanh approximation: transcendental goes to the EUP slot (free next to
        # the MXU on v6e/v7x) instead of a long VPU erf polynomial.
        return jax.nn.gelu(x, approximate=True)
    # nn.GELU() default: exact erf formulation.
    return 0.5 * x * (1.0 + lax.erf(x * (1.0 / math.sqrt(2.0))))


# ---------------------------------------------------------------------------
# Kernels
# ---------------------------------------------------------------------------
def _mlp_resident_kernel(x_ref, w1_ref, b1_ref, w2_ref, b2_ref, o_ref, *,
                         approx_gelu):
    """Grid point i: one M-tile; weights are VMEM-resident (constant blocks)."""
    h = jnp.dot(x_ref[...], w1_ref[...],
                preferred_element_type=jnp.float32)           # (tm, H) f32
    h = _gelu(h + b1_ref[...], approx_gelu)
    y = jnp.dot(h.astype(w2_ref.dtype), w2_ref[...],
                preferred_element_type=jnp.float32)           # (tm, D) f32
    o_ref[...] = (y + b2_ref[...]).astype(o_ref.dtype)


def _mlp_ktiled_kernel(x_ref, w1_ref, b1_ref, w2_ref, b2_ref, o_ref, acc_ref, *,
                       approx_gelu):
    """Fallback for very large H: grid (i, k), weights streamed in k-blocks."""
    k = pl.program_id(1)

    @pl.when(k == 0)
    def _():
        acc_ref[...] = jnp.zeros_like(acc_ref)

    h = jnp.dot(x_ref[...], w1_ref[...],
                preferred_element_type=jnp.float32)           # (tm, th) f32
    h = _gelu(h + b1_ref[...], approx_gelu)
    acc_ref[...] += jnp.dot(h.astype(w2_ref.dtype), w2_ref[...],
                            preferred_element_type=jnp.float32)

    @pl.when(k == pl.num_programs(1) - 1)
    def _():
        o_ref[...] = (acc_ref[...] + b2_ref[...]).astype(o_ref.dtype)


# ---------------------------------------------------------------------------
# VMEM budgeting
# ---------------------------------------------------------------------------
def _vmem_budget_bytes():
    """Per-generation VMEM limit to hand to Mosaic."""
    try:
        kind = jax.devices()[0].device_kind.lower()
    except Exception:  # pragma: no cover - defensive
        kind = ""
    if "v5" in kind or "v6" in kind:
        return 100 * 1024 * 1024        # 128 MiB physical
    return 56 * 1024 * 1024             # v7x: 64 MiB physical per TC / unknown


def _resident_vmem_need(tm, D, H, out_itemsize):
    """Rough upper bound of the resident-weight path's VMEM working set."""
    w_bytes = 2 * (D * H + H * D) * 2          # bf16 weights (x2 if dbl-buffered)
    x_bytes = 2 * tm * D * 2                   # double-buffered x tile (bf16)
    o_bytes = 2 * tm * D * out_itemsize        # double-buffered out tile
    b_bytes = 2 * (H + D) * 4                  # biases (f32)
    h_bytes = tm * H * (4 + 2)                 # f32 h intermediate + bf16 copy
    return w_bytes + x_bytes + o_bytes + b_bytes + h_bytes


# ---------------------------------------------------------------------------
# Wrapper
# ---------------------------------------------------------------------------
def mlp_forward(x, w1, b1, w2, b2, *, tm=None, th=1024, approx_gelu=False):
    """x: (B, N, D).  w1: (D, H), b1: (H,), w2: (H, D), b2: (D,).

    Weights are stored as (in_features, out_features) so the kernel computes
    y = x @ W + b (equivalent to PyTorch's x @ W.T with W of shape (out, in)).
    Matmuls run in bf16 with f32 accumulation; returns (B, N, D) in x.dtype.
    """
    B, N, D = x.shape
    H = w1.shape[1]
    M = B * N
    out_itemsize = jnp.dtype(x.dtype).itemsize

    vmem_budget = _vmem_budget_bytes()
    tm_nominal = 256 if tm is None else tm
    # Leave ~8 MiB headroom for Mosaic internals when deciding the path.
    resident = (_resident_vmem_need(tm_nominal, D, H, out_itemsize)
                + (8 << 20)) <= vmem_budget

    if tm is None:
        tm = 256 if resident else 512   # streaming path wants bigger M-tiles

    # Keep the M-block a multiple of 16 (bf16 sublane packing) and, when
    # possible, keep >=2 M-tiles so v7x's two TensorCores both get work on the
    # "parallel" axis.
    tm = max(16, min(tm, ((pl.cdiv(M, 2) + 15) // 16) * 16))
    Mp = pl.cdiv(M, tm) * tm            # pad tokens instead of shrinking tm

    x2 = x.reshape(M, D).astype(jnp.bfloat16)
    if Mp != M:
        x2 = jnp.pad(x2, ((0, Mp - M), (0, 0)))

    w1b = w1.astype(jnp.bfloat16)
    w2b = w2.astype(jnp.bfloat16)
    b1_2 = b1.reshape(1, H).astype(jnp.float32)
    b2_2 = b2.reshape(1, D).astype(jnp.float32)

    if resident:
        grid = (Mp // tm,)
        cost = pl.CostEstimate(
            flops=4 * M * D * H,                    # two matmuls: 2*M*D*H each
            transcendentals=M * H,
            bytes_accessed=(M * D * 2               # x (bf16)
                            + 2 * D * H * 2         # W1, W2 read once (bf16)
                            + (H + D) * 4           # biases (f32)
                            + M * D * out_itemsize),
        )
        out = pl.pallas_call(
            functools.partial(_mlp_resident_kernel, approx_gelu=approx_gelu),
            out_shape=jax.ShapeDtypeStruct((Mp, D), x.dtype),
            grid_spec=pltpu.PrefetchScalarGridSpec(
                num_scalar_prefetch=0,
                grid=grid,
                in_specs=[
                    pl.BlockSpec((tm, D), lambda i: (i, 0)),   # x tile
                    pl.BlockSpec((D, H), lambda i: (0, 0)),    # W1 (resident)
                    pl.BlockSpec((1, H), lambda i: (0, 0)),    # b1 (resident)
                    pl.BlockSpec((H, D), lambda i: (0, 0)),    # W2 (resident)
                    pl.BlockSpec((1, D), lambda i: (0, 0)),    # b2 (resident)
                ],
                out_specs=pl.BlockSpec((tm, D), lambda i: (i, 0)),
            ),
            compiler_params=pltpu.CompilerParams(
                dimension_semantics=("parallel",),
                vmem_limit_bytes=vmem_budget,
            ),
            cost_estimate=cost,
        )(x2, w1b, b1_2, w2b, b2_2)
    else:
        # Streaming fallback: tile the hidden dim, accumulate fc2 partial sums.
        th = min(th, max(128, ((H + 127) // 128) * 128))
        Hp = pl.cdiv(H, th) * th
        if Hp != H:
            # Zero-padded hidden units: GELU(0 + 0) = 0 and the matching zero
            # rows of W2 contribute nothing, so the result is unchanged.
            w1b = jnp.pad(w1b, ((0, 0), (0, Hp - H)))
            b1_2 = jnp.pad(b1_2, ((0, 0), (0, Hp - H)))
            w2b = jnp.pad(w2b, ((0, Hp - H), (0, 0)))
        grid = (Mp // tm, Hp // th)
        n_i = Mp // tm
        cost = pl.CostEstimate(
            flops=4 * M * D * H,
            transcendentals=M * H,
            bytes_accessed=(Mp * D * 2
                            + n_i * 2 * D * Hp * 2   # weights re-read per i-tile
                            + n_i * (Hp + D) * 4
                            + Mp * D * out_itemsize),
        )
        out = pl.pallas_call(
            functools.partial(_mlp_ktiled_kernel, approx_gelu=approx_gelu),
            out_shape=jax.ShapeDtypeStruct((Mp, D), x.dtype),
            grid_spec=pltpu.PrefetchScalarGridSpec(
                num_scalar_prefetch=0,
                grid=grid,
                in_specs=[
                    pl.BlockSpec((tm, D), lambda i, k: (i, 0)),   # x tile
                    pl.BlockSpec((D, th), lambda i, k: (0, k)),   # W1 k-block
                    pl.BlockSpec((1, th), lambda i, k: (0, k)),   # b1 k-block
                    pl.BlockSpec((th, D), lambda i, k: (k, 0)),   # W2 k-block
                    pl.BlockSpec((1, D), lambda i, k: (0, 0)),    # b2
                ],
                out_specs=pl.BlockSpec((tm, D), lambda i, k: (i, 0)),
                scratch_shapes=[pltpu.VMEM((tm, D), jnp.float32)],
            ),
            compiler_params=pltpu.CompilerParams(
                dimension_semantics=("parallel", "arbitrary"),
                vmem_limit_bytes=vmem_budget,
            ),
            cost_estimate=cost,
        )(x2, w1b, b1_2, w2b, b2_2)

    return out[:M].reshape(B, N, D)


def init_params(key, embed_dim, mlp_ratio=4.0):
    """Deterministic init matching nn.Linear default (uniform +/- 1/sqrt(fan_in))."""
    hidden = int(embed_dim * mlp_ratio)
    k1, k2, k3, k4 = jax.random.split(key, 4)
    lim1 = 1.0 / math.sqrt(embed_dim)
    lim2 = 1.0 / math.sqrt(hidden)
    w1 = jax.random.uniform(k1, (embed_dim, hidden), jnp.float32, -lim1, lim1)
    b1 = jax.random.uniform(k2, (hidden,), jnp.float32, -lim1, lim1)
    w2 = jax.random.uniform(k3, (hidden, embed_dim), jnp.float32, -lim2, lim2)
    b2 = jax.random.uniform(k4, (embed_dim,), jnp.float32, -lim2, lim2)
    return w1, b1, w2, b2


if __name__ == "__main__":
    key = jax.random.PRNGKey(0)
    kx, kp = jax.random.split(key)

    # Small but lane-dense demo shapes: embed_dim=128 -> hidden=512.
    B, N, D = 2, 16, 128
    x = jax.random.normal(kx, (B, N, D), dtype=jnp.float32)
    w1, b1, w2, b2 = init_params(kp, D, mlp_ratio=4.0)

    out = mlp_forward(x, w1, b1, w2, b2)
    out = jax.block_until_ready(out)

    # Pure-JAX reference with matching precision (bf16 matmuls, f32 accumulation).
    xb = x.reshape(-1, D).astype(jnp.bfloat16)
    h = jnp.dot(xb, w1.astype(jnp.bfloat16),
                preferred_element_type=jnp.float32) + b1
    h = _gelu(h, approx=False)
    ref = jnp.dot(h.astype(jnp.bfloat16), w2.astype(jnp.bfloat16),
                  preferred_element_type=jnp.float32) + b2
    ref = ref.reshape(B, N, D).astype(x.dtype)

    assert out.shape == (B, N, D)
    assert jnp.allclose(out, ref, atol=2e-2, rtol=2e-2), "mismatch vs reference"

    print("KERNEL_OK")
</pallas_src>

<mosaic_0001>
module attributes {stable_mosaic.version = 11 : i64} {
  func.func @_mlp_resident_kernel(%arg0: i32, %arg1: memref<16x128xbf16, #tpu.memory_space<vmem>>, %arg2: memref<128x512xbf16, #tpu.memory_space<vmem>>, %arg3: memref<1x512xf32, #tpu.memory_space<vmem>>, %arg4: memref<512x128xbf16, #tpu.memory_space<vmem>>, %arg5: memref<1x128xf32, #tpu.memory_space<vmem>>, %arg6: memref<16x128xf32, #tpu.memory_space<vmem>>) attributes {dimension_semantics = [#tpu.dimension_semantics<parallel>], iteration_bounds = array<i64: 2>, scalar_prefetch = 0 : i64, scratch_operands = 0 : i64, tpu.core_type = #tpu.core_type<tc>, window_params = [{transform_indices = @transform_0, window_bounds = array<i64: 16, 128>}, {pipeline_mode = #tpu.pipeline_mode<synchronous>, transform_indices = @transform_1, window_bounds = array<i64: 128, 512>}, {pipeline_mode = #tpu.pipeline_mode<synchronous>, transform_indices = @transform_2, window_bounds = array<i64: 1, 512>}, {pipeline_mode = #tpu.pipeline_mode<synchronous>, transform_indices = @transform_3, window_bounds = array<i64: 512, 128>}, {pipeline_mode = #tpu.pipeline_mode<synchronous>, transform_indices = @transform_4, window_bounds = array<i64: 1, 128>}, {transform_indices = @transform_5, window_bounds = array<i64: 16, 128>}]} {
    %c0 = arith.constant 0 : index
    %c0_0 = arith.constant 0 : index
    %0 = vector.load %arg1[%c0, %c0_0] : memref<16x128xbf16, #tpu.memory_space<vmem>>, vector<16x128xbf16>
    %c0_1 = arith.constant 0 : index
    %c0_2 = arith.constant 0 : index
    %1 = vector.load %arg2[%c0_1, %c0_2] : memref<128x512xbf16, #tpu.memory_space<vmem>>, vector<128x512xbf16>
    %cst = arith.constant dense<0.000000e+00> : vector<16x512xf32>
    %2 = tpu.matmul %0, %1, %cst {dimension_numbers = #tpu.dot_dimension_numbers<[1], [0], [0], [1], [0, 0, 1, 1], [], []>} : vector<16x128xbf16>, vector<128x512xbf16>, vector<16x512xf32> -> vector<16x512xf32>
    %c0_3 = arith.constant 0 : index
    %c0_4 = arith.constant 0 : index
    %3 = vector.load %arg3[%c0_3, %c0_4] : memref<1x512xf32, #tpu.memory_space<vmem>>, vector<1x512xf32>
    %4 = vector.broadcast %3 : vector<1x512xf32> to vector<16x512xf32>
    %5 = arith.addf %2, %4 : vector<16x512xf32>
    %cst_5 = arith.constant 5.000000e-01 : f32
    %6 = vector.broadcast %cst_5 : f32 to vector<16x512xf32>
    %7 = arith.mulf %6, %5 : vector<16x512xf32>
    %cst_6 = arith.constant 0.707106769 : f32
    %8 = vector.broadcast %cst_6 : f32 to vector<16x512xf32>
    %9 = arith.mulf %5, %8 : vector<16x512xf32>
    %10 = math.erf %9 : vector<16x512xf32>
    %cst_7 = arith.constant 1.000000e+00 : f32
    %11 = vector.broadcast %cst_7 : f32 to vector<16x512xf32>
    %12 = arith.addf %11, %10 : vector<16x512xf32>
    %13 = arith.mulf %7, %12 : vector<16x512xf32>
    %14 = arith.truncf %13 : vector<16x512xf32> to vector<16x512xbf16>
    %c0_8 = arith.constant 0 : index
    %c0_9 = arith.constant 0 : index
    %15 = vector.load %arg4[%c0_8, %c0_9] : memref<512x128xbf16, #tpu.memory_space<vmem>>, vector<512x128xbf16>
    %cst_10 = arith.constant dense<0.000000e+00> : vector<16x128xf32>
    %16 = tpu.matmul %14, %15, %cst_10 {dimension_numbers = #tpu.dot_dimension_numbers<[1], [0], [0], [1], [0, 0, 1, 1], [], []>} : vector<16x512xbf16>, vector<512x128xbf16>, vector<16x128xf32> -> vector<16x128xf32>
    %c0_11 = arith.constant 0 : index
    %c0_12 = arith.constant 0 : index
    %17 = vector.load %arg5[%c0_11, %c0_12] : memref<1x128xf32, #tpu.memory_space<vmem>>, vector<1x128xf32>
    %18 = vector.broadcast %17 : vector<1x128xf32> to vector<16x128xf32>
    %19 = arith.addf %16, %18 : vector<16x128xf32>
    %c0_13 = arith.constant 0 : index
    %c0_14 = arith.constant 0 : index
    %20 = vector.load %arg6[%c0_13, %c0_14] : memref<16x128xf32, #tpu.memory_space<vmem>>, vector<16x128xf32>
    tpu.vector_store %arg6[%c0_13, %c0_14], %19 {strides = array<i32>} : memref<16x128xf32, #tpu.memory_space<vmem>>, vector<16x128xf32>,
    return
  }
  func.func @transform_0(%arg0: i32) -> (i32, i32) {
    %c0_i32 = arith.constant 0 : i32
    %c0_i32_0 = arith.constant 0 : i32
    return %arg0, %c0_i32 : i32, i32
  }
  func.func @transform_1(%arg0: i32) -> (i32, i32) {
    %c0_i32 = arith.constant 0 : i32
    %c0_i32_0 = arith.constant 0 : i32
    %c0_i32_1 = arith.constant 0 : i32
    return %c0_i32, %c0_i32_0 : i32, i32
  }
  func.func @transform_2(%arg0: i32) -> (i32, i32) {
    %c0_i32 = arith.constant 0 : i32
    %c0_i32_0 = arith.constant 0 : i32
    %c0_i32_1 = arith.constant 0 : i32
    return %c0_i32, %c0_i32_0 : i32, i32
  }
  func.func @transform_3(%arg0: i32) -> (i32, i32) {
    %c0_i32 = arith.constant 0 : i32
    %c0_i32_0 = arith.constant 0 : i32
    %c0_i32_1 = arith.constant 0 : i32
    return %c0_i32, %c0_i32_0 : i32, i32
  }
  func.func @transform_4(%arg0: i32) -> (i32, i32) {
    %c0_i32 = arith.constant 0 : i32
    %c0_i32_0 = arith.constant 0 : i32
    %c0_i32_1 = arith.constant 0 : i32
    return %c0_i32, %c0_i32_0 : i32, i32
  }
  func.func @transform_5(%arg0: i32) -> (i32, i32) {
    %c0_i32 = arith.constant 0 : i32
    %c0_i32_0 = arith.constant 0 : i32
    return %arg0, %c0_i32 : i32, i32
  }
}

</mosaic_0001>

<bundles_post_ra>
// kernel: tpu_custom_call.1
= control target key start
LH: loop header
LB: loop body
LE: loop exit
PB: predicated region body
PF: predicated region fallthrough
CT: control target
= control target key end

     0   :  { %10 = vsyncpa [#allocation3], 0  ;;  %s1830_s0 = inlined_call_operand.hbm [shape: bf16[32,128], index: 0, kind: input, shape index: {}]   ;;  %s1831_s1 = inlined_call_operand.hbm [shape: bf16[128,512], index: 1, kind: input, shape index: {}]   ;;  %s1832_s2 = inlined_call_operand.vmem [shape: f32[1,512], index: 2, kind: input, shape index: {}]   ;;  %s1833_s3 = inlined_call_operand.hbm [shape: bf16[512,128], index: 3, kind: input, shape index: {}]   ;;  %s1834_s4 = inlined_call_operand.vmem [shape: f32[1,128], index: 4, kind: input, shape index: {}]   ;;  %s1835_s5 = inlined_call_operand.hbm [shape: f32[32,128], index: 5, kind: output, shape index: {}]  }
   0x1   :  { %12 = vsyncpa [#allocation3 + $0x1], 0 }
   0x2   :  { %13 = vsyncpa [#allocation6], 0 }
   0x3   :  { %14 = vsyncpa [#allocation4], 0 }
   0x4   :  { %16 = vsyncpa [#allocation4 + $0x1], 0  ;;  %s1580_s18 = smov 0   ;;  %s1582_s19 = smov 0  }
   0x5   :  { %s1584_s20 = smov 0   ;;  %s1586_s21 = smov 0  }
   0x6 LB: > { %s1601_s22 = sadd.s32 4294967295, %s1537_s21   ;;  %s1080_s23 = sadd.s32 4294967294, %s1537_s21   ;;  %s1537_s21 = sphi %s1586_s21, %s1855_s21   ;;  %s1533_s20 = sphi %s1584_s20, %s1854_s20   ;;  %s1529_s19 = sphi %s1582_s19, %s1853_s19   ;;  %s1525_s18 = sphi %s1580_s18, %s1852_s18  }
   0x7   : > { %p42_p0 = scmp.ne.s32.totalorder %s1529_s19, %s1525_s18  ;;  %p1836_p1 = scmp.eq.s32.totalorder %s1601_s22, 0 }
   0x8   : > { %p156_p3 = scmp.eq.s32.totalorder %s1080_s23, 1  ;;  %p1081_p5 = scmp.ge.s32.totalorder %s1537_s21, 1 }
   0x9   : > { %p1610_p4 = por %p1836_p1, %p42_p0  ;;  %p163_p7 = scmp.lt.s32.totalorder %s1537_s21, 3 }
   0xa   : > { %p1615_p6 = por %p156_p3, %p42_p0  ;;  %s1539_s27 = smov [#allocation5]  }
   0xb   : > { %s1839_s24 = scalar_select %p1610_p4, 1, 0 }
   0xc   : > { %s1840_s25 = scalar_select %p1615_p6, 1, 0 }
   0xd   : > { %p1620_p8 = pnand %p1081_p5, %p163_p7  ;;  %s175_s28 = sshll.u32 %s1539_s27, 4  ;;  %s1624_s28 = int_to_ptr.vmem [resolvable:$true] %s175_s28 }
   0xe   : > { %s1540_s30 = smov [#allocation7]   ;;  %s1381_s9 = scalar_lea.hbm %s1831_s1, 4096 }
   0xf   : > { %p1222_p9 = pneg %p1620_p8  ;;  %s191_s6 = sshll.u32 %s1540_s30, 4  ;;  %s1635_s6 = int_to_ptr.vmem [resolvable:$true] %s191_s6 }
  0x10   : > { %p1382_p12 = scmp.ne.s32.totalorder %s1831_s1, %s1381_s9  ;;  %p1388_p5 = scmp.lt.u32.totalorder %s1381_s9, %s1831_s1 }
  0x11   : > { %p1631_p11 = pnand %p1222_p9, %p1836_p1 }
  0x13   : > { %p1383_p13 = pneg %p1631_p11 }
  0x15   : > { %p1384_p0 = pnand %p1383_p13, %p1382_p12 }
  0x17   : > { %p1385_p3 = pneg %p1384_p0 }
  0x19   : > { %p1390_p7 = pnand %p1388_p5, %p1385_p3 }
  0x1b   : > { %1393 = shalt.err (!%p1390_p7)
}
  0x1c   : > { %s1394_s14 = scalar_lea.vmem %s1624_s28, 4096  ;;  %p1402_p2 = scmp.lt.s32.totalorder %s1624_s28, %s1624_s28 }
  0x1d   : > { %p1395_p9 = scmp.ne.s32.totalorder %s1624_s28, %s1394_s14  ;;  %p1403_p12 = scmp.lt.s32.totalorder %s1394_s14, %s1394_s14 }
  0x1f   : > { %p1397_p10 = pnand %p1395_p9, %p1383_p13  ;;  %p1404_p0 = por %p1403_p12, %p1402_p2 }
  0x21   : > { %p1398_p1 = pneg %p1397_p10 }
  0x23   : > { %p1405_p6 = pnand %p1404_p0, %p1398_p1 }
  0x25   : > { %1408 = shalt.err (!%p1405_p6)
}
  0x26   : > { %s1541_s15 = smov 256   ;;  %s1542_s16 = smov 16  }
  0x27   : > { %1225 = dma.hbm_to_vmem [thread:$0]  (!%p1631_p11), %s1831_s1, 4096, %s1624_s28, [#allocation6], %s1541_s15, %s1541_s15, %s1542_s16  }
  0x28   : > { %s1409_s7 = scalar_lea.hbm %s1833_s3, 4096 }
  0x29   : > { %p1410_p2 = scmp.ne.s32.totalorder %s1833_s3, %s1409_s7  ;;  %p1416_p10 = scmp.lt.u32.totalorder %s1409_s7, %s1833_s3 }
  0x2b   : > { %p1412_p1 = pnand %p1410_p2, %p1383_p13 }
  0x2d   : > { %p1413_p6 = pneg %p1412_p1 }
  0x2f   : > { %p1418_p3 = pnand %p1416_p10, %p1413_p6 }
  0x31   : > { %1421 = shalt.err (!%p1418_p3)
}
  0x32   : > { %s1422_s28 = scalar_lea.vmem %s1635_s6, 4096  ;;  %p1430_p12 = scmp.lt.s32.totalorder %s1635_s6, %s1635_s6 }
  0x33   : > { %p1423_p5 = scmp.ne.s32.totalorder %s1635_s6, %s1422_s28  ;;  %p1431_p0 = scmp.lt.s32.totalorder %s1422_s28, %s1422_s28 }
  0x35   : > { %p1425_p7 = pnand %p1423_p5, %p1383_p13  ;;  %p1432_p2 = por %p1431_p0, %p1430_p12 }
  0x37   : > { %p1426_p9 = pneg %p1425_p7 }
  0x39   : > { %p1433_p1 = pnand %p1432_p2, %p1426_p9 }
  0x3b   : > { %1436 = shalt.err (!%p1433_p1)
}
  0x3c   : > { %s1543_s12 = smov 64   ;;  %s1544_s13 = smov 4  }
  0x3d   : > { %1228 = dma.hbm_to_vmem [thread:$0]  (!%p1631_p11), %s1833_s3, 4096, %s1635_s6, [#allocation6], %s1543_s12, %s1543_s12, %s1544_s13  }
  0x3e   : > { %s1693_s16 = sadd.s32 1, %s1537_s21   ;;  %s29_s23 = sadd.s32 1, %s1533_s20 }
  0x3f   : > { %s26_s17 = ssub.s32 %s1537_s21, %s1693_s16  ;;  %p36_p6 = scmp.ne.s32.totalorder %s1533_s20, %s1529_s19 }
  0x40   : > { %p27_p13 = scmp.eq.s32.totalorder %s26_s17, 0  ;;  %p37_p10 = scmp.eq.s32.totalorder %s1537_s21, 0 }
  0x41   : > { %p1843_p5 = scmp.eq.s32.totalorder %s1601_s22, 1  ;;  %p1239_p9 = scmp.lt.s32.totalorder %s1537_s21, 2 }
  0x42   : > { %s1702_s27 = scalar_select %p27_p13, %s1533_s20, %s29_s23  }
  0x43   : > { %p38_p3 = por %p37_p10, %p36_p6  ;;  %p1706_p7 = por %p1843_p5, %p36_p6 }
  0x44   : > { %s208_s30 = sand.u32 1, %s1533_s20   ;;  %s1164_s6 = sshll.u32 %s1537_s21, 7 }
  0x45   : > { %s1844_s29 = scalar_select %p1706_p7, 1, 0 }
  0x46   : > { %s1085_s7 = sshll.u32 %s208_s30, 3  ;;  %s1716_s10 = scalar_lea.hbm %s1830_s0, %s1164_s6 }
  0x47   : > { %s212_s11 = scalar_lea.vmem [#allocation2], %s1085_s7  ;;  %p1720_p11 = pnand %p1239_p9, %p38_p3 }
  0x48   : > { %s219_s28 = sshll.u32 %s212_s11, 4  ;;  %s1724_s15 = scalar_lea.sflag [#allocation3], %s208_s30  ;;  %s1718_s28 = int_to_ptr.vmem [resolvable:$true] %s219_s28 }
  0x49   : > { %s1437_s17 = scalar_lea.hbm %s1716_s10, 128  ;;  %p1439_p0 = pneg %p1720_p11 }
  0x4a   : > { %p1438_p12 = scmp.ne.s32.totalorder %s1716_s10, %s1437_s17  ;;  %s1442_s6 = scalar_lea.hbm %s1830_s0, 256 }
  0x4b   : > { %p1443_p13 = scmp.lt.u32.totalorder %s1716_s10, %s1830_s0  ;;  %p1444_p6 = scmp.lt.u32.totalorder %s1442_s6, %s1437_s17 }
  0x4c   : > { %p1440_p2 = pnand %p1439_p0, %p1438_p12  ;;  %p1446_p3 = scmp.lt.u32.totalorder %s1437_s17, %s1716_s10 }
  0x4d   : > { %p1445_p10 = por %p1444_p6, %p1443_p13 }
  0x4e   : > { %p1441_p1 = pneg %p1440_p2 }
  0x4f   : > { %p1447_p5 = por %p1446_p3, %p1445_p10 }
  0x51   : > { %p1448_p9 = pnand %p1447_p5, %p1441_p1 }
  0x53   : > { %1451 = shalt.err (!%p1448_p9)
}
  0x54   : > { %s1452_s30 = scalar_lea.vmem %s1718_s28, 128  ;;  %s1545_s11 = smov [#allocation2]  }
  0x55   : > { %p1453_p12 = scmp.ne.s32.totalorder %s1718_s28, %s1452_s30  ;;  %s1457_s23 = sshll.u32 %s1545_s11, 4  ;;  %s1458_s23 = int_to_ptr.vmem [resolvable:$false] %s1457_s23 }
  0x56   : > { %s1459_s7 = scalar_lea.vmem %s1458_s23, 256  ;;  %p1460_p4 = scmp.lt.s32.totalorder %s1718_s28, %s1458_s23 }
  0x57   : > { %p1455_p2 = pnand %p1453_p12, %p1439_p0  ;;  %p1461_p13 = scmp.lt.s32.totalorder %s1459_s7, %s1452_s30 }
  0x59   : > { %p1456_p7 = pneg %p1455_p2  ;;  %p1462_p6 = por %p1461_p13, %p1460_p4 }
  0x5b   : > { %p1463_p10 = pnand %p1462_p6, %p1456_p7 }
  0x5d   : > { %1466 = shalt.err (!%p1463_p10)
}
  0x5e   : > { %1232 = dma.hbm_to_vmem [thread:$0]  (!%p1720_p11), %s1716_s10, 128, %s1718_s28, %s1724_s15, %s1543_s12, %s1543_s12, %s1544_s13  }
  0x5f   : > { %231 = sbr.rel (%p1620_p8) target bundleno = 616 (0x268), region = 40  ;;  %s1758_s17 = sand.u32 (!%p1620_p8), 1, %s1529_s19  }
  0x60   : > { %s1089_s6 = sshll.u32 (!%p1620_p8), %s1758_s17, 3  ;;  %s234_s8 = scalar_lea.sflag (!%p1620_p8), [#allocation3], %s1758_s17 }
  0x61   : > { %s1762_s9 = scalar_lea.vmem (!%p1620_p8), [#allocation2], %s1089_s6  ;;  %p1846_p4 = scmp.ne.s32.totalorder (!%p1620_p8), %s1839_s24, 0 }
  0x66   : > { %1512 = dma.done.wait (%p1846_p4), %s234_s8, 128  }
  0x67   : > { %1514 = vsyncadd (%p1846_p4), %s234_s8, 4294967168  ;;  %p1847_p7 = scmp.eq.s32.totalorder %s1601_s22, 0 }
  0x69   : > { %1516 = dma.done.wait (%p1847_p7), [#allocation6], 8192   ;;  %p1848_p8 = pmov %p1847_p7 }
  0x6a   : > { %v1546_v0 = vmov 0   ;;  %v1284_v1 = vld [vmem:[#allocation5 + $0x4] ss:$16 sps:$4 sm:$0xff]   ;;  %v1286_v2 = vld [vmem:[#allocation5 + $0xc] ss:$16 sps:$4 sm:$0xff]   ;;  %s1092_s12 = sshll.u32 %s1758_s17, 4 }
  0x6b   : > { %1518 = vsyncadd (%p1848_p8), [#allocation6], 4294959104  ;;  %529 = vmatprep.mubr.bf16.mxu0 %v1546_v0  ;;  %572 = vmatprep.mubr.bf16.mxu1 %v1546_v0  ;;  %v1288_v3 = vld [vmem:[#allocation5] ss:$16 sps:$4 sm:$0xff]   ;;  %v1289_v4 = vld [vmem:[#allocation5 + $0x8] ss:$16 sps:$4 sm:$0xff]  }
  0x6c   : > { %497 = vmatprep.subr.bf16.mxu0 %v1284_v1  ;;  %540 = vmatprep.subr.bf16.mxu1 %v1286_v2  ;;  %v1290_v5 = vld [vmem:[#allocation5 + $0x24] ss:$16 sps:$4 sm:$0xff]   ;;  %v1292_v6 = vld [vmem:[#allocation5 + $0x2c] ss:$16 sps:$4 sm:$0xff]   ;;  %v1294_v7 = vld [vmem:[#allocation5 + $0x20] ss:$16 sps:$4 sm:$0xff]   ;;  %v311_v2 = vlaneseq }
  0x6d   : > { %498 = vmatpush1.bf16.msra.mxu0 %v1288_v3  ;;  %541 = vmatpush1.bf16.msra.mxu1 %v1289_v4  ;;  %v1295_v8 = vld [vmem:[#allocation5 + $0x28] ss:$16 sps:$4 sm:$0xff]   ;;  %v1296_v9 = vld [vmem:[#allocation5 + $0x44] ss:$16 sps:$4 sm:$0xff]   ;;  %v1298_v10 = vld [vmem:[#allocation5 + $0x4c] ss:$16 sps:$4 sm:$0xff]  }
  0x6e   : > { %499 = vmatprep.subr.bf16.mxu0 %v1290_v5  ;;  %542 = vmatprep.subr.bf16.mxu1 %v1292_v6  ;;  %v1300_v11 = vld [vmem:[#allocation5 + $0x40] ss:$16 sps:$4 sm:$0xff]   ;;  %v1301_v12 = vld [vmem:[#allocation5 + $0x48] ss:$16 sps:$4 sm:$0xff]   ;;  %v1302_v13 = vld [vmem:[#allocation5 + $0x64] ss:$16 sps:$4 sm:$0xff]  }
  0x6f   : > { %v1304_v14 = vld [vmem:[#allocation5 + $0x6c] ss:$16 sps:$4 sm:$0xff]   ;;  %v1306_v15 = vld [vmem:[#allocation5 + $0x60] ss:$16 sps:$4 sm:$0xff]   ;;  %v1307_v16 = vld [vmem:[#allocation5 + $0x68] ss:$16 sps:$4 sm:$0xff]  }
  0x70   : > { %v1308_v17 = vld [vmem:[#allocation5 + $0x84] ss:$16 sps:$4 sm:$0xff]   ;;  %v1310_v18 = vld [vmem:[#allocation5 + $0x8c] ss:$16 sps:$4 sm:$0xff]   ;;  %v1312_v19 = vld [vmem:[#allocation5 + $0x80] ss:$16 sps:$4 sm:$0xff]  }
  0x71   : > { %500 = vmatpush1.bf16.msra.mxu0 %v1294_v7  ;;  %543 = vmatpush1.bf16.msra.mxu1 %v1295_v8  ;;  %v1313_v20 = vld [vmem:[#allocation5 + $0x88] ss:$16 sps:$4 sm:$0xff]   ;;  %v1314_v21 = vld [vmem:[#allocation5 + $0xa4] ss:$16 sps:$4 sm:$0xff]   ;;  %v1316_v22 = vld [vmem:[#allocation5 + $0xac] ss:$16 sps:$4 sm:$0xff]  }
  0x72   : > { %501 = vmatprep.subr.bf16.mxu0 %v1296_v9  ;;  %544 = vmatprep.subr.bf16.mxu1 %v1298_v10  ;;  %v1318_v23 = vld [vmem:[#allocation5 + $0xa0] ss:$16 sps:$4 sm:$0xff]   ;;  %v1319_v24 = vld [vmem:[#allocation5 + $0xa8] ss:$16 sps:$4 sm:$0xff]   ;;  %v1320_v25 = vld [vmem:[#allocation5 + $0xc4] ss:$16 sps:$4 sm:$0xff]  }
  0x73   : > { %v1322_v26 = vld [vmem:[#allocation5 + $0xcc] ss:$16 sps:$4 sm:$0xff]   ;;  %v1324_v27 = vld [vmem:[#allocation5 + $0xc0] ss:$16 sps:$4 sm:$0xff]   ;;  %v1325_v28 = vld [vmem:[#allocation5 + $0xc8] ss:$16 sps:$4 sm:$0xff]  }
  0x74   : > { %v1326_v29 = vld [vmem:[#allocation5 + $0xe4] ss:$16 sps:$4 sm:$0xff]   ;;  %v1328_v30 = vld [vmem:[#allocation5 + $0xec] ss:$16 sps:$4 sm:$0xff]   ;;  %v1330_v31 = vld [vmem:[#allocation5 + $0xe0] ss:$16 sps:$4 sm:$0xff]  }
  0x75   : > { %502 = vmatpush1.bf16.msra.mxu0 %v1300_v11  ;;  %545 = vmatpush1.bf16.msra.mxu1 %v1301_v12  ;;  %v1331_v32 = vld [vmem:[#allocation5 + $0xe8] ss:$16 sps:$4 sm:$0xff]   ;;  %v1333_v33 = vld [vmem:[#allocation7 + $0x40] sm:$0xff]   ;;  %v1341_v42 = vld [vmem:[#allocation7 + $0x50] sm:$0xff]   ;;  %v312_v3 = vshrl.u32 %v311_v2, 7  ;;  %s271_s28 = scalar_lea.vmem [#allocation8], %s1092_s12 }
  0x76   : > { %503 = vmatprep.subr.bf16.mxu0 %v1302_v13  ;;  %546 = vmatprep.subr.bf16.mxu1 %v1304_v14  ;;  %v1332_v34 = vld [vmem:[%s1762_s9] sm:$0xff]   ;;  %v1334_v35 = vld [vmem:[#allocation7 + $0xc0] sm:$0xff]   ;;  %v1337_v38 = vld [vmem:[#allocation7 + $0x48] sm:$0xff]   ;;  %s988_s14 = sshll.u32 %s271_s28, 4  ;;  %s1165_s15 = sshll.u32 %s1601_s22, 8  ;;  %s1781_s14 = int_to_ptr.vmem [resolvable:$true] %s988_s14 }
  0x77   : > { %v1335_v36 = vld [vmem:[#allocation7] sm:$0xff]   ;;  %v1338_v39 = vld [vmem:[#allocation7 + $0xc8] sm:$0xff]   ;;  %v1342_v43 = vld [vmem:[#allocation7 + $0xd0] sm:$0xff]   ;;  %v313_v4 = vsub.s32 0, %v312_v3  ;;  %v321_v5 = vsub.s32 2, %v312_v3  ;;  %v317_v7 = vsub.s32 1, %v312_v3  ;;  %s1786_s23 = scalar_lea.hbm %s1835_s5, %s1165_s15 }
  0x78   : > { %v1336_v37 = vld [vmem:[#allocation7 + $0x80] sm:$0xff]   ;;  %v1339_v40 = vld [vmem:[#allocation7 + $0x8] sm:$0xff]   ;;  %v1343_v44 = vld [vmem:[#allocation7 + $0x10] sm:$0xff]   ;;  %v325_v8 = vsub.s32 3, %v312_v3  ;;  %s975_s7 = scalar_lea.sflag [#allocation4], %s1758_s17  ;;  %s1467_s6 = scalar_lea.vmem %s1781_s14, 256 }
  0x79   : > { %504 = vmatpush1.bf16.msra.mxu0 %v1306_v15  ;;  %547 = vmatpush1.bf16.msra.mxu1 %v1307_v16  ;;  %v1340_v41 = vld [vmem:[#allocation7 + $0x88] sm:$0xff]   ;;  %v1344_v45 = vld [vmem:[#allocation7 + $0x90] sm:$0xff]   ;;  %v1345_v46 = vld [vmem:[#allocation7 + $0x58] sm:$0xff]   ;;  %p1468_p11 = scmp.ne.s32.totalorder %s1781_s14, %s1467_s6  ;;  %p1849_p0 = scmp.ne.s32.totalorder %s1844_s29, 0 }
  0x7a   : > { %505 = vmatprep.subr.bf16.mxu0 %v1308_v17  ;;  %548 = vmatprep.subr.bf16.mxu1 %v1310_v18  ;;  %v1346_v47 = vld [vmem:[#allocation7 + $0xd8] sm:$0xff]   ;;  %v1349_v50 = vld [vmem:[#allocation7 + $0x60] sm:$0xff]   ;;  %v1353_v54 = vld [vmem:[#allocation7 + $0x68] sm:$0xff]   ;;  %s1547_s22 = smov [#allocation8]  }
  0x7b   : > { %v1347_v48 = vld [vmem:[#allocation7 + $0x18] sm:$0xff]   ;;  %v1350_v51 = vld [vmem:[#allocation7 + $0xe0] sm:$0xff]   ;;  %v1354_v55 = vld [vmem:[#allocation7 + $0xe8] sm:$0xff]   ;;  %p1469_p1 = pnand %p1468_p11, %p1849_p0  ;;  %s1471_s8 = sshll.u32 %s1547_s22, 4  ;;  %s1472_s8 = int_to_ptr.vmem [resolvable:$false] %s1471_s8 }
  0x7c   : > { %v1348_v49 = vld [vmem:[#allocation7 + $0x98] sm:$0xff]   ;;  %v1351_v52 = vld [vmem:[#allocation7 + $0x20] sm:$0xff]   ;;  %v1355_v56 = vld [vmem:[#allocation7 + $0x28] sm:$0xff]   ;;  %s1473_s9 = scalar_lea.vmem %s1472_s8, 512  ;;  %p1474_p5 = scmp.lt.s32.totalorder %s1781_s14, %s1472_s8 }
  0x7d   : > { %506 = vmatpush1.bf16.msra.mxu0 %v1312_v19  ;;  %549 = vmatpush1.bf16.msra.mxu1 %v1313_v20  ;;  %v1352_v53 = vld [vmem:[#allocation7 + $0xa0] sm:$0xff]   ;;  %v1356_v57 = vld [vmem:[#allocation7 + $0xa8] sm:$0xff]   ;;  %v1357_v58 = vld [vmem:[#allocation7 + $0x70] sm:$0xff]   ;;  %p1470_p3 = pneg %p1469_p1  ;;  %p1475_p9 = scmp.lt.s32.totalorder %s1473_s9, %s1467_s6 }
  0x7e   : > { %507 = vmatprep.subr.bf16.mxu0 %v1314_v21  ;;  %550 = vmatprep.subr.bf16.mxu1 %v1316_v22  ;;  %v1358_v59 = vld [vmem:[#allocation7 + $0xf0] sm:$0xff]   ;;  %v1361_v62 = vld [vmem:[#allocation7 + $0x78] sm:$0xff]  }
  0x7f   : > { %v1359_v60 = vld [vmem:[#allocation7 + $0x30] sm:$0xff]   ;;  %v1362_v63 = vld [vmem:[#allocation7 + $0xf8] sm:$0xff]   ;;  %p1476_p12 = por %p1475_p9, %p1474_p5 }
  0x80   : > { %v1360_v61 = vld [vmem:[#allocation7 + $0xb0] sm:$0xff]   ;;  %v1363_v0 = vld [vmem:[#allocation7 + $0x38] sm:$0xff]  }
  0x81   : > { %508 = vmatpush1.bf16.msra.mxu0 %v1318_v23  ;;  %551 = vmatpush1.bf16.msra.mxu1 %v1319_v24  ;;  %v1364_v1 = vld [vmem:[#allocation7 + $0xb8] sm:$0xff]   ;;  %v309_v6 = vld [vmem:[%s1832_s2] sm:$0xf]  ;;  %p1477_p2 = pnand %p1476_p12, %p1470_p3 }
  0x82   : > { %509 = vmatprep.subr.bf16.mxu0 %v1320_v25  ;;  %552 = vmatprep.subr.bf16.mxu1 %v1322_v26  ;;  %v314_v9 = vrot.slane %v309_v6, %v313_v4  ;;  %v322_v10 = vrot.slane %v309_v6, %v321_v5  ;;  %v318_v11 = vrot.slane %v309_v6, %v317_v7 }
  0x83   : > { %v326_v12 = vrot.slane %v309_v6, %v325_v8 }
  0x85   : > { %510 = vmatpush1.bf16.msra.mxu0 %v1324_v27  ;;  %553 = vmatpush1.bf16.msra.mxu1 %v1325_v28 }
  0x86   : > { %511 = vmatprep.subr.bf16.mxu0 %v1326_v29  ;;  %554 = vmatprep.subr.bf16.mxu1 %v1328_v30 }
  0x89   : > { %512 = vmatpush1.bf16.msra.mxu0 %v1330_v31  ;;  %555 = vmatpush1.bf16.msra.mxu1 %v1331_v32 }
  0x8a   : > { %1166 = vmatprep.subr.bf16.mxu0 %v1333_v33  ;;  %1188 = vmatprep.subr.bf16.mxu1 %v1334_v35 }
  0x8c   : > { %530 = vmatmul.mubr.bf16.vlgmr.msra.gmra.mrb[0].mxu0 %v1332_v34  ;;  %573 = vmatmul.mubr.bf16.vlgmr.msra.gmra.mrb[0].mxu1 %v1332_v34 }
  0x8d   : > { %1167 = vmatpush3.bf16.msra.mxu0 %v1335_v36  ;;  %1189 = vmatpush3.bf16.msra.mxu1 %v1336_v37 }
  0x8e   : > { %1168 = vmatprep.subr.bf16.mxu0 %v1337_v38  ;;  %1190 = vmatprep.subr.bf16.mxu1 %v1338_v39 }
  0x91   : > { %1169 = vmatpush3.bf16.msra.mxu0 %v1339_v40  ;;  %1191 = vmatpush3.bf16.msra.mxu1 %v1340_v41 }
  0x92   : > { %1170 = vmatprep.subr.bf16.mxu0 %v1341_v42  ;;  %1192 = vmatprep.subr.bf16.mxu1 %v1342_v43 }
  0x95   : > { %1171 = vmatpush3.bf16.msra.mxu0 %v1343_v44  ;;  %1193 = vmatpush3.bf16.msra.mxu1 %v1344_v45 }
  0x96   : > { %1172 = vmatprep.subr.bf16.mxu0 %v1345_v46  ;;  %1194 = vmatprep.subr.bf16.mxu1 %v1346_v47 }
  0x99   : > { %1173 = vmatpush3.bf16.msra.mxu0 %v1347_v48  ;;  %1195 = vmatpush3.bf16.msra.mxu1 %v1348_v49 }
  0x9a   : > { %1174 = vmatprep.subr.bf16.mxu0 %v1349_v50  ;;  %1196 = vmatprep.subr.bf16.mxu1 %v1350_v51 }
  0x9d   : > { %1175 = vmatpush3.bf16.msra.mxu0 %v1351_v52  ;;  %1197 = vmatpush3.bf16.msra.mxu1 %v1352_v53 }
  0x9e   : > { %1176 = vmatprep.subr.bf16.mxu0 %v1353_v54  ;;  %1198 = vmatprep.subr.bf16.mxu1 %v1354_v55 }
  0xa1   : > { %1177 = vmatpush3.bf16.msra.mxu0 %v1355_v56  ;;  %1199 = vmatpush3.bf16.msra.mxu1 %v1356_v57 }
  0xa2   : > { %1178 = vmatprep.subr.bf16.mxu0 %v1357_v58  ;;  %1200 = vmatprep.subr.bf16.mxu1 %v1358_v59 }
  0xa5   : > { %1179 = vmatpush3.bf16.msra.mxu0 %v1359_v60  ;;  %1201 = vmatpush3.bf16.msra.mxu1 %v1360_v61 }
  0xa6   : > { %1180 = vmatprep.subr.bf16.mxu0 %v1361_v62  ;;  %1202 = vmatprep.subr.bf16.mxu1 %v1362_v63 }
  0xa9   : > { %1181 = vmatpush3.bf16.msra.mxu0 %v1363_v0  ;;  %1203 = vmatpush3.bf16.msra.mxu1 %v1364_v1 }
 0x15f   : > { %v531_v13 = vpop.f32.mrb[0].mxu0  ;;  %v574_v14 = vpop.f32.mrb[0].mxu1 }
 0x160   : > { %v532_v15 = vadd.f32 %v531_v13, %v314_v9  ;;  %v575_v16 = vadd.f32 %v574_v14, %v322_v10  ;;  %v533_v17 = vpop.f32.mrb[1].mxu0  ;;  %v576_v18 = vpop.f32.mrb[1].mxu1 }
 0x161   : > { %v534_v19 = vadd.f32 %v533_v17, %v318_v11  ;;  %v577_v20 = vadd.f32 %v576_v18, %v326_v12  ;;  %v535_v21 = vpop.f32.mrb[2].mxu0  ;;  %v578_v22 = vpop.f32.mrb[2].mxu1 }
 0x162   : > { %v591_v23 = vmul.f32 0.70710677, %v532_v15  ;;  %v593_v24 = vmul.f32 0.70710677, %v575_v16  ;;  %v536_v27 = vadd.f32 %v535_v21, %v314_v9  ;;  %v579_v28 = vadd.f32 %v578_v22, %v322_v10  ;;  %v537_v29 = vpop.f32.mrb[3].mxu0  ;;  %v580_v30 = vpop.f32.mrb[3].mxu1 }
 0x163   : > { %v592_v25 = vmul.f32 0.70710677, %v534_v19  ;;  %v594_v26 = vmul.f32 0.70710677, %v577_v20  ;;  %v538_v31 = vadd.f32 %v537_v29, %v318_v11  ;;  %v581_v32 = vadd.f32 %v580_v30, %v326_v12  ;;  %v1126_v11 = vld [vmem:[%s1834_s4] ss:$0 sm:$0xff] }
 0x164   : > { %1365 = verf.f32 %v591_v23  ;;  %v595_v33 = vmul.f32 0.70710677, %v536_v27  ;;  %v597_v34 = vmul.f32 0.70710677, %v579_v28  ;;  %v583_v43 = vmul.f32 0.5, %v532_v15 }
 0x165   : > { %1367 = verf.f32 %v593_v24  ;;  %v596_v35 = vmul.f32 0.70710677, %v538_v31  ;;  %v598_v36 = vmul.f32 0.70710677, %v581_v32  ;;  %v585_v44 = vmul.f32 0.5, %v575_v16 }
 0x166   : > { %1369 = verf.f32 %v592_v25  ;;  %v584_v47 = vmul.f32 0.5, %v534_v19  ;;  %v587_v49 = vmul.f32 0.5, %v536_v27  ;;  %v586_v52 = vmul.f32 0.5, %v577_v20 }
 0x167   : > { %1371 = verf.f32 %v594_v26  ;;  %v589_v54 = vmul.f32 0.5, %v579_v28  ;;  %v588_v59 = vmul.f32 0.5, %v538_v31  ;;  %v590_v63 = vmul.f32 0.5, %v581_v32 }
 0x168   : > { %1373 = verf.f32 %v595_v33 }
 0x169   : > { %1375 = verf.f32 %v597_v34 }
 0x16a   : > { %1377 = verf.f32 %v596_v35 }
 0x16b   : > { %1379 = verf.f32 %v598_v36 }
 0x16e   : > { %v1366_v37 = vpop.eup %1365 }
 0x16f   : > { %v1368_v38 = vpop.eup %1367  ;;  %v607_v41 = vadd.f32 1.0, %v1366_v37 }
 0x170   : > { %v1370_v39 = vpop.eup %1369  ;;  %v609_v45 = vadd.f32 1.0, %v1368_v38 }
 0x171   : > { %v1372_v40 = vpop.eup %1371  ;;  %v608_v48 = vadd.f32 1.0, %v1370_v39  ;;  %v615_v57 = vmul.f32 %v607_v41, %v583_v43 }
 0x172   : > { %v1374_v42 = vpop.eup %1373  ;;  %v610_v53 = vadd.f32 1.0, %v1372_v40  ;;  %v617_v61 = vmul.f32 %v609_v45, %v585_v44 }
 0x173   : > { %v1376_v46 = vpop.eup %1375  ;;  %v611_v50 = vadd.f32 1.0, %v1374_v42  ;;  %v616_v1 = vmul.f32 %v608_v48, %v584_v47 }
 0x174   : > { %v1378_v51 = vpop.eup %1377  ;;  %v613_v55 = vadd.f32 1.0, %v1376_v46  ;;  %v618_v4 = vmul.f32 %v610_v53, %v586_v52 }
 0x175   : > { %v1380_v56 = vpop.eup %1379  ;;  %v619_v58 = vmul.f32 %v611_v50, %v587_v49  ;;  %v612_v60 = vadd.f32 1.0, %v1378_v51 }
 0x176   : > { %v621_v62 = vmul.f32 %v613_v55, %v589_v54  ;;  %v614_v0 = vadd.f32 1.0, %v1380_v56 }
 0x177   : > { %v623_v2 = vpack.c.bf16 %v619_v58, %v615_v57  ;;  %v620_v3 = vmul.f32 %v612_v60, %v588_v59 }
 0x178   : > { %v625_v5 = vpack.c.bf16 %v621_v62, %v617_v61  ;;  %v622_v6 = vmul.f32 %v614_v0, %v590_v63 }
 0x179   : > { %v624_v7 = vpack.c.bf16 %v620_v3, %v616_v1 }
 0x17a   : > { %v626_v8 = vpack.c.bf16 %v622_v6, %v618_v4 }
 0x17b   : > { %922 = vmatprep.mubr.bf16.mxu0 %v624_v7 }
 0x17c   : > { %963 = vmatprep.mubr.bf16.mxu1 %v626_v8  ;;  %923 = vmatmul.mubr.bf16.vlgmr.msra.gmra.mrb[4].mxu0 %v623_v2 }
 0x17d   : > { %964 = vmatmul.mubr.bf16.vlgmr.msra.gmra.mrb[4].mxu1 %v625_v5 }
 0x24f   : > { %v1182_v9 = vpop.f32.mrb[4].mxu0 }
 0x250   : > { %v1204_v10 = vpop.f32.mrb[4].mxu1  ;;  %v1183_v12 = vpop.f32.mrb[5].mxu0 }
 0x251   : > { %v1184_v13 = vadd.f32 %v1183_v12, %v1182_v9  ;;  %v1205_v14 = vpop.f32.mrb[5].mxu1  ;;  %v1185_v15 = vpop.f32.mrb[6].mxu0 }
 0x252   : > { %v1206_v16 = vadd.f32 %v1205_v14, %v1204_v10  ;;  %v1207_v17 = vpop.f32.mrb[6].mxu1  ;;  %v1186_v18 = vpop.f32.mrb[7].mxu0 }
 0x253   : > { %v925_v19 = vadd.f32 %v1184_v13, %v1126_v11  ;;  %v1187_v20 = vadd.f32 %v1186_v18, %v1185_v15  ;;  %v1208_v21 = vpop.f32.mrb[7].mxu1 }
 0x254   : > { %v1209_v22 = vadd.f32 %v1208_v21, %v1207_v17 }
 0x255   : > { %v966_v23 = vadd.f32 %v1206_v16, %v925_v19  ;;  %v928_v24 = vadd.f32 %v1187_v20, %v1126_v11 }
 0x257   : > { %972 = vst [vmem:[%s271_s28] sm:$0xff] %v966_v23  ;;  %v969_v25 = vadd.f32 %v1209_v22, %v928_v24 }
 0x259   : > { %973 = vst [vmem:[%s271_s28 + $0x8] sm:$0xff] %v969_v25 }
 0x25a   : > { %1480 = shalt.err (!%p1477_p2)
}
 0x25b   : > { %s1481_s24 = scalar_lea.hbm %s1786_s23, 256  ;;  %s1485_s13 = scalar_lea.hbm %s1835_s5, 512 }
 0x25c   : > { %p1482_p13 = scmp.ne.s32.totalorder %s1786_s23, %s1481_s24  ;;  %p1486_p4 = scmp.lt.u32.totalorder %s1786_s23, %s1835_s5 }
 0x25d   : > { %p1487_p7 = scmp.lt.u32.totalorder %s1485_s13, %s1481_s24  ;;  %p1489_p11 = scmp.lt.u32.totalorder %s1481_s24, %s1786_s23 }
 0x25e   : > { %p1483_p6 = pnand %p1482_p13, %p1849_p0 }
 0x25f   : > { %p1488_p8 = por %p1487_p7, %p1486_p4 }
 0x260   : > { %p1484_p10 = pneg %p1483_p6 }
 0x261   : > { %p1490_p1 = por %p1489_p11, %p1488_p8 }
 0x263   : > { %p1491_p3 = pnand %p1490_p1, %p1484_p10 }
 0x265   : > { %1494 = shalt.err (!%p1491_p3)
}
 0x266   : > { %s1548_s15 = smov 128   ;;  %s1549_s30 = smov 8  }
 0x267   : > { %1220 = dma.vmem_to_hbm [thread:$0]  (%p1849_p0), %s1781_s14, 256, %s1786_s23, %s975_s7, %s1548_s15, %s1548_s15, %s1549_s30  }
 0x268 PF: > { %s1003_s11 = sand.u32 1, %s1525_s18   ;;  %p1850_p5 = scmp.ne.s32.totalorder %s1840_s25, 0 }
 0x269   : > { %p1851_p9 = scmp.ge.s32.totalorder %s1537_s21, 2  ;;  %s1004_s6 = scalar_lea.sflag [#allocation4], %s1003_s11 }
 0x26b   : > { %p1234_p12 = pnand %p1851_p9, %p1850_p5 }
 0x26d   : > { %1520 = dma.done.wait (!%p1234_p12), %s1004_s6, 256  }
 0x26e   : > { %1522 = vsyncadd (!%p1234_p12), %s1004_s6, 4294967040  ;;  %p19_p2 = scmp.ge.s32.totalorder %s1693_s16, 4   ;;  %s1852_s18 = smov %s1529_s19 }
 0x26f   : > { %s1853_s19 = smov %s1533_s20  ;;  %s1854_s20 = smov %s1702_s27 }
 0x270   : > { %s1855_s21 = smov %s1693_s16  ;;  %21 = sbr.rel (!%p19_p2) target bundleno = 6 (0x6), region = 93 }
 0x277   :  { %1009 = vsyncpa [#allocation3], 1 }
 0x278   :  { %1011 = vsyncpa [#allocation3 + $0x1], 1 }
 0x279   :  { %1012 = vsyncpa [#allocation6], 1 }
 0x27a   :  { %1013 = vsyncpa [#allocation4], 1 }
 0x27b   :  { %1015 = vsyncpa [#allocation4 + $0x1], 1 }

</bundles_post_ra>
